<compile_context>
chip_gen: v5e
topology: v5e:2x2
jax: 0.10.0
libtpu: 0.0.40
codegen_flags: <defaults>
</compile_context>

<pallas_src>
import jax
import jax.numpy as jnp
from jax.experimental import pallas as pl
from jax.experimental.pallas import tpu as pltpu

IN_FEATURES = 1152
HIDDEN = 64
OUT_FEATURES = 10

HIDDEN_PAD = 128   # pad hidden 64 -> 128 (full lane width, zero-padded)
MAX_TB = 1024      # batch tile cap (~9 MiB double-buffered x tile, fits all chips)


def _round_up(n: int, m: int) -> int:
    return ((n + m - 1) // m) * m


def servernet_kernel(x_ref, w1_ref, b1_ref, w2_ref, b2_ref, o_ref):
    # In-kernel bf16 cast of x (free on the VPU; x is read from HBM as f32 once).
    x = x_ref[...].astype(jnp.bfloat16)
    # fc1: (TB, 1152) bf16 @ (1152, 128) bf16 -> f32 accumulate on the MXU.
    h = jnp.dot(x, w1_ref[...], preferred_element_type=jnp.float32)
    # Bias + ReLU epilogue in f32 (v5e VPU has no bf16).  Padded columns stay 0.
    h = jnp.maximum(h + b1_ref[...], 0.0)
    # fc2: (TB, 128) bf16 @ (128, 10) bf16 -> (TB, 10) f32 accumulate.
    out = jnp.dot(h.astype(jnp.bfloat16), w2_ref[...],
                  preferred_element_type=jnp.float32)
    o_ref[...] = (out + b2_ref[...]).astype(o_ref.dtype)


def prepare_params(w1, b1, w2, b2):
    """One-time (init-time) padding / dtype plumbing.  Hoisted out of the
    forward so the pallas_call is the only op on the hot path.

    w1: (1152, 64), b1: (64,), w2: (64, 10), b2: (10,).
    """
    w1_p = (jnp.zeros((IN_FEATURES, HIDDEN_PAD), jnp.float32)
            .at[:, :HIDDEN].set(w1).astype(jnp.bfloat16))
    b1_p = (jnp.zeros((1, HIDDEN_PAD), jnp.float32)
            .at[:, :HIDDEN].set(jnp.reshape(b1, (1, HIDDEN))))
    w2_p = (jnp.zeros((HIDDEN_PAD, OUT_FEATURES), jnp.float32)
            .at[:HIDDEN, :].set(w2).astype(jnp.bfloat16))
    b2_p = jnp.reshape(b2, (1, OUT_FEATURES)).astype(jnp.float32)
    return w1_p, b1_p, w2_p, b2_p


def servernet_forward(x, w1_p, b1_p, w2_p, b2_p):
    """x: (B, 1152) f32; params from prepare_params().  Returns (B, 10) f32."""
    B = x.shape[0]

    # Batch tile: multiple of 8, capped at MAX_TB, and for large B sized so the
    # grid has >= 2 steps (lets v7x split the "parallel" axis across its 2 TCs).
    if B >= 8:
        tb = max(8, min(MAX_TB, _round_up(pl.cdiv(B, 2), 8)))
    else:
        tb = B  # block dim == full array dim is always legal
    grid = (pl.cdiv(B, tb),)  # last block may overhang; OOB rows are masked out

    return pl.pallas_call(
        servernet_kernel,
        out_shape=jax.ShapeDtypeStruct((B, OUT_FEATURES), jnp.float32),
        grid=grid,
        in_specs=[
            pl.BlockSpec((tb, IN_FEATURES), lambda i: (i, 0)),          # x tile
            pl.BlockSpec((IN_FEATURES, HIDDEN_PAD), lambda i: (0, 0)),  # w1 resident
            pl.BlockSpec((1, HIDDEN_PAD), lambda i: (0, 0)),            # b1 resident
            pl.BlockSpec((HIDDEN_PAD, OUT_FEATURES), lambda i: (0, 0)), # w2 resident
            pl.BlockSpec((1, OUT_FEATURES), lambda i: (0, 0)),          # b2 resident
        ],
        out_specs=pl.BlockSpec((tb, OUT_FEATURES), lambda i: (i, 0)),
        compiler_params=pltpu.CompilerParams(
            dimension_semantics=("parallel",),   # v7x: split batch across TCs
            vmem_limit_bytes=32 * 1024 * 1024,   # ~10 MiB working set at TB=1024
        ),
    )(x, w1_p, b1_p, w2_p, b2_p)


def init_params(key):
    """Deterministic synthetic params matching nn.Linear shapes.

    PyTorch nn.Linear stores weight as (out, in); we keep the transposed
    (in, out) layout so the kernel does plain row-major matmuls.
    """
    k1, k2, k3, k4 = jax.random.split(key, 4)
    bound1 = 1.0 / (IN_FEATURES ** 0.5)
    bound2 = 1.0 / (HIDDEN ** 0.5)
    w1 = jax.random.uniform(k1, (IN_FEATURES, HIDDEN), jnp.float32, -bound1, bound1)
    b1 = jax.random.uniform(k2, (HIDDEN,), jnp.float32, -bound1, bound1)
    w2 = jax.random.uniform(k3, (HIDDEN, OUT_FEATURES), jnp.float32, -bound2, bound2)
    b2 = jax.random.uniform(k4, (OUT_FEATURES,), jnp.float32, -bound2, bound2)
    return w1, b1, w2, b2


def reference_forward(x, w1, b1, w2, b2):
    """Pure-JAX reference with the same bf16 rounding of x/w1/h/w2 as the
    kernel (f32 accumulation), so the comparison is apples-to-apples.
    NOTE: bf16 inputs deviate slightly from exact f32 PyTorch semantics;
    acceptable for this module's accuracy budget (final atol << 1e-2 vs f32).
    """
    xb = x.astype(jnp.bfloat16).astype(jnp.float32)
    w1b = w1.astype(jnp.bfloat16).astype(jnp.float32)
    h = jnp.maximum(xb @ w1b + b1[None, :], 0.0)
    hb = h.astype(jnp.bfloat16).astype(jnp.float32)
    w2b = w2.astype(jnp.bfloat16).astype(jnp.float32)
    return hb @ w2b + b2[None, :]


if __name__ == "__main__":
    key = jax.random.PRNGKey(0)
    kx, kp = jax.random.split(key)

    B = 8  # small batch for the self-test
    x = jax.random.normal(kx, (B, IN_FEATURES), jnp.float32)
    w1, b1, w2, b2 = init_params(kp)

    # One-time parameter plumbing (hoisted out of the forward hot path).
    w1_p, b1_p, w2_p, b2_p = prepare_params(w1, b1, w2, b2)

    out = servernet_forward(x, w1_p, b1_p, w2_p, b2_p)
    out = jax.block_until_ready(out)

    ref = reference_forward(x, w1, b1, w2, b2)
    assert out.shape == (B, OUT_FEATURES)
    assert jnp.allclose(out, ref, atol=1e-2, rtol=1e-2), (
        float(jnp.max(jnp.abs(out - ref))))

    print("KERNEL_OK")
</pallas_src>

<mosaic_0001>
module attributes {stable_mosaic.version = 11 : i64} {
  func.func @servernet_kernel(%arg0: i32, %arg1: memref<8x1152xf32, #tpu.memory_space<vmem>>, %arg2: memref<1152x128xbf16, #tpu.memory_space<vmem>>, %arg3: memref<1x128xf32, #tpu.memory_space<vmem>>, %arg4: memref<128x10xbf16, #tpu.memory_space<vmem>>, %arg5: memref<1x10xf32, #tpu.memory_space<vmem>>, %arg6: memref<8x10xf32, #tpu.memory_space<vmem>>) attributes {dimension_semantics = [#tpu.dimension_semantics<parallel>], iteration_bounds = array<i64: 1>, scalar_prefetch = 0 : i64, scratch_operands = 0 : i64, tpu.core_type = #tpu.core_type<tc>, window_params = [{transform_indices = @transform_0, window_bounds = array<i64: 8, 1152>}, {pipeline_mode = #tpu.pipeline_mode<synchronous>, transform_indices = @transform_1, window_bounds = array<i64: 1152, 128>}, {pipeline_mode = #tpu.pipeline_mode<synchronous>, transform_indices = @transform_2, window_bounds = array<i64: 1, 128>}, {pipeline_mode = #tpu.pipeline_mode<synchronous>, transform_indices = @transform_3, window_bounds = array<i64: 128, 10>}, {pipeline_mode = #tpu.pipeline_mode<synchronous>, transform_indices = @transform_4, window_bounds = array<i64: 1, 10>}, {transform_indices = @transform_5, window_bounds = array<i64: 8, 10>}]} {
    %c0 = arith.constant 0 : index
    %c0_0 = arith.constant 0 : index
    %0 = vector.load %arg1[%c0, %c0_0] : memref<8x1152xf32, #tpu.memory_space<vmem>>, vector<8x1152xf32>
    %1 = arith.truncf %0 : vector<8x1152xf32> to vector<8x1152xbf16>
    %c0_1 = arith.constant 0 : index
    %c0_2 = arith.constant 0 : index
    %2 = vector.load %arg2[%c0_1, %c0_2] : memref<1152x128xbf16, #tpu.memory_space<vmem>>, vector<1152x128xbf16>
    %cst = arith.constant dense<0.000000e+00> : vector<8x128xf32>
    %3 = tpu.matmul %1, %2, %cst {dimension_numbers = #tpu.dot_dimension_numbers<[1], [0], [0], [1], [0, 0, 1, 1], [], []>} : vector<8x1152xbf16>, vector<1152x128xbf16>, vector<8x128xf32> -> vector<8x128xf32>
    %c0_3 = arith.constant 0 : index
    %c0_4 = arith.constant 0 : index
    %4 = vector.load %arg3[%c0_3, %c0_4] : memref<1x128xf32, #tpu.memory_space<vmem>>, vector<1x128xf32>
    %5 = vector.broadcast %4 : vector<1x128xf32> to vector<8x128xf32>
    %6 = arith.addf %3, %5 : vector<8x128xf32>
    %cst_5 = arith.constant 0.000000e+00 : f32
    %7 = vector.broadcast %cst_5 : f32 to vector<8x128xf32>
    %8 = arith.maximumf %6, %7 : vector<8x128xf32>
    %9 = arith.truncf %8 : vector<8x128xf32> to vector<8x128xbf16>
    %c0_6 = arith.constant 0 : index
    %c0_7 = arith.constant 0 : index
    %10 = vector.load %arg4[%c0_6, %c0_7] : memref<128x10xbf16, #tpu.memory_space<vmem>>, vector<128x10xbf16>
    %cst_8 = arith.constant dense<0.000000e+00> : vector<8x10xf32>
    %11 = tpu.matmul %9, %10, %cst_8 {dimension_numbers = #tpu.dot_dimension_numbers<[1], [0], [0], [1], [0, 0, 1, 1], [], []>} : vector<8x128xbf16>, vector<128x10xbf16>, vector<8x10xf32> -> vector<8x10xf32>
    %c0_9 = arith.constant 0 : index
    %c0_10 = arith.constant 0 : index
    %12 = vector.load %arg5[%c0_9, %c0_10] : memref<1x10xf32, #tpu.memory_space<vmem>>, vector<1x10xf32>
    %13 = vector.broadcast %12 : vector<1x10xf32> to vector<8x10xf32>
    %14 = arith.addf %11, %13 : vector<8x10xf32>
    %c0_11 = arith.constant 0 : index
    %c0_12 = arith.constant 0 : index
    %15 = vector.load %arg6[%c0_11, %c0_12] : memref<8x10xf32, #tpu.memory_space<vmem>>, vector<8x10xf32>
    tpu.vector_store %arg6[%c0_11, %c0_12], %14 {strides = array<i32>} : memref<8x10xf32, #tpu.memory_space<vmem>>, vector<8x10xf32>,
    return
  }
  func.func @transform_0(%arg0: i32) -> (i32, i32) {
    %c0_i32 = arith.constant 0 : i32
    %c0_i32_0 = arith.constant 0 : i32
    return %arg0, %c0_i32 : i32, i32
  }
  func.func @transform_1(%arg0: i32) -> (i32, i32) {
    %c0_i32 = arith.constant 0 : i32
    %c0_i32_0 = arith.constant 0 : i32
    %c0_i32_1 = arith.constant 0 : i32
    return %c0_i32, %c0_i32_0 : i32, i32
  }
  func.func @transform_2(%arg0: i32) -> (i32, i32) {
    %c0_i32 = arith.constant 0 : i32
    %c0_i32_0 = arith.constant 0 : i32
    %c0_i32_1 = arith.constant 0 : i32
    return %c0_i32, %c0_i32_0 : i32, i32
  }
  func.func @transform_3(%arg0: i32) -> (i32, i32) {
    %c0_i32 = arith.constant 0 : i32
    %c0_i32_0 = arith.constant 0 : i32
    %c0_i32_1 = arith.constant 0 : i32
    return %c0_i32, %c0_i32_0 : i32, i32
  }
  func.func @transform_4(%arg0: i32) -> (i32, i32) {
    %c0_i32 = arith.constant 0 : i32
    %c0_i32_0 = arith.constant 0 : i32
    %c0_i32_1 = arith.constant 0 : i32
    return %c0_i32, %c0_i32_0 : i32, i32
  }
  func.func @transform_5(%arg0: i32) -> (i32, i32) {
    %c0_i32 = arith.constant 0 : i32
    %c0_i32_0 = arith.constant 0 : i32
    return %arg0, %c0_i32 : i32, i32
  }
}

</mosaic_0001>

<bundles_post_ra>
// kernel: tpu_custom_call.1
= control target key start
LH: loop header
LB: loop body
LE: loop exit
PB: predicated region body
PF: predicated region fallthrough
CT: control target
= control target key end

     0   :  { %10 = vsyncpa [#allocation3], 0  ;;  %s1409_s0 = inlined_call_operand.vmem [shape: f32[8,1152], index: 0, kind: input, shape index: {}]   ;;  %s1410_s1 = inlined_call_operand.hbm [shape: bf16[1152,128], index: 1, kind: input, shape index: {}]   ;;  %s1411_s2 = inlined_call_operand.vmem [shape: f32[1,128], index: 2, kind: input, shape index: {}]   ;;  %s1412_s3 = inlined_call_operand.vmem [shape: bf16[128,10], index: 3, kind: input, shape index: {}]   ;;  %s1413_s4 = inlined_call_operand.vmem [shape: f32[1,10], index: 4, kind: input, shape index: {}]   ;;  %s1414_s5 = inlined_call_operand.hbm [shape: f32[8,10], index: 5, kind: output, shape index: {}]  }
   0x1   :  { %11 = vsyncpa [#allocation4], 0  ;;  %s18_s20 = sshll.u32 %s1410_s1, 4  ;;  %s1312_s21 = smov [#allocation2]   ;;  %s19_s20 = int_to_ptr.hbm [resolvable:$true] %s18_s20 }
   0x2   :  { %s20_s22 = sshll.u32 %s1312_s21, 4  ;;  %s1313_s23 = smov 64   ;;  %s21_s22 = int_to_ptr.vmem [resolvable:$true] %s20_s22 }
   0x3   :  { %s1314_s24 = smov 4  }
   0x4   :  { %26 = dma.hbm_to_vmem [thread:$0]  %s19_s20, 9216, %s21_s22, [#allocation3], %s1313_s23, %s1313_s23, %s1314_s24  }
   0x5   :  { %1308 = dma.done.wait [#allocation3], 9216  }
   0x6   :  { %1309 = vsyncadd [#allocation3], 4294958080  ;;  %v1181_v0 = vld [vmem:[#allocation2 + $0x38] sm:$0xff]  ;;  %v1180_v4 = vld [vmem:[#allocation2 + $0x30] sm:$0xff]  ;;  %s1315_s8 = smov [#allocation5]   ;;  %s844_s12 = sshll.u32 %s1414_s5, 4  ;;  %s845_s12 = int_to_ptr.hbm [resolvable:$true] %s844_s12 }
   0x7   :  { %v1197_v1 = vld [vmem:[#allocation2 + $0xb8] sm:$0xff]  ;;  %635 = vmatpush.bf16.msra.mxu0 %v1181_v0  ;;  %v1196_v5 = vld [vmem:[#allocation2 + $0xb0] sm:$0xff]  ;;  %v1179_v8 = vld [vmem:[#allocation2 + $0x28] sm:$0xff]  ;;  %s842_s9 = sshll.u32 %s1315_s8, 4  ;;  %vm835_vm0 = vcmask 80896   ;;  %s843_s9 = int_to_ptr.vmem [resolvable:$true] %s842_s9 }
   0x8   :  { %v1205_v2 = vld [vmem:[#allocation2 + $0xf8] sm:$0xff]  ;;  %661 = vmatpush.bf16.msra.mxu2 %v1197_v1  ;;  %v1204_v6 = vld [vmem:[#allocation2 + $0xf0] sm:$0xff]  ;;  %v1195_v9 = vld [vmem:[#allocation2 + $0xa8] sm:$0xff] }
   0x9   :  { %v1189_v3 = vld [vmem:[#allocation2 + $0x78] sm:$0xff]  ;;  %674 = vmatpush.bf16.msra.mxu3 %v1205_v2  ;;  %v1188_v7 = vld [vmem:[#allocation2 + $0x70] sm:$0xff]  ;;  %v1203_v10 = vld [vmem:[#allocation2 + $0xe8] sm:$0xff] }
   0xa   :  { %648 = vmatpush.bf16.msra.mxu1 %v1189_v3  ;;  %v1187_v11 = vld [vmem:[#allocation2 + $0x68] sm:$0xff]  ;;  %v1178_v12 = vld [vmem:[#allocation2 + $0x20] sm:$0xff]  ;;  %v1177_v16 = vld [vmem:[#allocation2 + $0x18] sm:$0xff] }
   0xb   :  { %636 = vmatpush.bf16.msra.mxu0 %v1180_v4  ;;  %v1194_v13 = vld [vmem:[#allocation2 + $0xa0] sm:$0xff]  ;;  %v1193_v17 = vld [vmem:[#allocation2 + $0x98] sm:$0xff]  ;;  %v1176_v20 = vld [vmem:[#allocation2 + $0x10] sm:$0xff] }
   0xc   :  { %662 = vmatpush.bf16.msra.mxu2 %v1196_v5  ;;  %v1202_v14 = vld [vmem:[#allocation2 + $0xe0] sm:$0xff]  ;;  %v1201_v18 = vld [vmem:[#allocation2 + $0xd8] sm:$0xff]  ;;  %v1192_v21 = vld [vmem:[#allocation2 + $0x90] sm:$0xff] }
   0xd   :  { %675 = vmatpush.bf16.msra.mxu3 %v1204_v6  ;;  %v1186_v15 = vld [vmem:[#allocation2 + $0x60] sm:$0xff]  ;;  %v1185_v19 = vld [vmem:[#allocation2 + $0x58] sm:$0xff]  ;;  %v1200_v22 = vld [vmem:[#allocation2 + $0xd0] sm:$0xff] }
   0xe   :  { %649 = vmatpush.bf16.msra.mxu1 %v1188_v7  ;;  %v1184_v23 = vld [vmem:[#allocation2 + $0x50] sm:$0xff]  ;;  %v1175_v24 = vld [vmem:[#allocation2 + $0x8] sm:$0xff]  ;;  %v1174_v28 = vld [vmem:[#allocation2] sm:$0xff] }
   0xf   :  { %637 = vmatpush.bf16.msra.mxu0 %v1179_v8  ;;  %v1191_v25 = vld [vmem:[#allocation2 + $0x88] sm:$0xff]  ;;  %v1213_v29 = vld [vmem:[#allocation2 + $0x138] sm:$0xff]  ;;  %v1190_v30 = vld [vmem:[#allocation2 + $0x80] sm:$0xff] }
  0x10   :  { %663 = vmatpush.bf16.msra.mxu2 %v1195_v9  ;;  %v1199_v26 = vld [vmem:[#allocation2 + $0xc8] sm:$0xff]  ;;  %v1229_v31 = vld [vmem:[#allocation2 + $0x1b8] sm:$0xff]  ;;  %v39_v32 = vld [vmem:[%s1409_s0 + $0x10] sm:$0xff] }
  0x11   :  { %676 = vmatpush.bf16.msra.mxu3 %v1203_v10  ;;  %v1183_v27 = vld [vmem:[#allocation2 + $0x48] sm:$0xff]  ;;  %v37_v33 = vld [vmem:[%s1409_s0] sm:$0xff]  ;;  %v1237_v35 = vld [vmem:[#allocation2 + $0x1f8] sm:$0xff]  ;;  %v48_v40 = vpack.c.bf16 %v39_v32, %v39_v32 }
  0x12   :  { %650 = vmatpush.bf16.msra.mxu1 %v1187_v11  ;;  %v1198_v34 = vld [vmem:[#allocation2 + $0xc0] sm:$0xff]  ;;  %v1221_v37 = vld [vmem:[#allocation2 + $0x178] sm:$0xff]  ;;  %v38_v39 = vld [vmem:[%s1409_s0 + $0x8] sm:$0xff]  ;;  %v46_v41 = vpack.c.bf16 %v37_v33, %v37_v33 }
  0x13   :  { %638 = vmatpush.bf16.msra.mxu0 %v1178_v12  ;;  %v1182_v36 = vld [vmem:[#allocation2 + $0x40] sm:$0xff]  ;;  %v40_v38 = vld [vmem:[%s1409_s0 + $0x18] sm:$0xff]  ;;  %v1212_v42 = vld [vmem:[#allocation2 + $0x130] sm:$0xff]  ;;  %v47_v45 = vpack.c.bf16 %v38_v39, %v38_v39 }
  0x14   :  { %664 = vmatpush.bf16.msra.mxu2 %v1194_v13  ;;  %v1228_v43 = vld [vmem:[#allocation2 + $0x1b0] sm:$0xff]  ;;  %v49_v44 = vpack.c.bf16 %v40_v38, %v40_v38  ;;  %v1211_v48 = vld [vmem:[#allocation2 + $0x128] sm:$0xff]  ;;  %v1210_v52 = vld [vmem:[#allocation2 + $0x120] sm:$0xff] }
  0x15   :  { %677 = vmatpush.bf16.msra.mxu3 %v1202_v14  ;;  %v1236_v46 = vld [vmem:[#allocation2 + $0x1f0] sm:$0xff]  ;;  %v1227_v49 = vld [vmem:[#allocation2 + $0x1a8] sm:$0xff]  ;;  %v1226_v53 = vld [vmem:[#allocation2 + $0x1a0] sm:$0xff] }
  0x16   :  { %651 = vmatpush.bf16.msra.mxu1 %v1186_v15  ;;  %v1220_v47 = vld [vmem:[#allocation2 + $0x170] sm:$0xff]  ;;  %v1235_v50 = vld [vmem:[#allocation2 + $0x1e8] sm:$0xff]  ;;  %v1234_v54 = vld [vmem:[#allocation2 + $0x1e0] sm:$0xff] }
  0x17   :  { %639 = vmatpush.bf16.msra.mxu0 %v1177_v16  ;;  %v1219_v51 = vld [vmem:[#allocation2 + $0x168] sm:$0xff]  ;;  %v1218_v55 = vld [vmem:[#allocation2 + $0x160] sm:$0xff]  ;;  %v1209_v56 = vld [vmem:[#allocation2 + $0x118] sm:$0xff] }
  0x18   :  { %665 = vmatpush.bf16.msra.mxu2 %v1193_v17  ;;  %v1225_v57 = vld [vmem:[#allocation2 + $0x198] sm:$0xff]  ;;  %v1208_v60 = vld [vmem:[#allocation2 + $0x110] sm:$0xff]  ;;  %v1207_v0 = vld [vmem:[#allocation2 + $0x108] sm:$0xff] }
  0x19   :  { %678 = vmatpush.bf16.msra.mxu3 %v1201_v18  ;;  %v1233_v58 = vld [vmem:[#allocation2 + $0x1d8] sm:$0xff]  ;;  %v1224_v61 = vld [vmem:[#allocation2 + $0x190] sm:$0xff]  ;;  %v1223_v1 = vld [vmem:[#allocation2 + $0x188] sm:$0xff] }
  0x1a   :  { %652 = vmatpush.bf16.msra.mxu1 %v1185_v19  ;;  %v1217_v59 = vld [vmem:[#allocation2 + $0x158] sm:$0xff]  ;;  %v1232_v62 = vld [vmem:[#allocation2 + $0x1d0] sm:$0xff]  ;;  %v1231_v2 = vld [vmem:[#allocation2 + $0x1c8] sm:$0xff] }
  0x1b   :  { %640 = vmatpush.bf16.msra.mxu0 %v1176_v20  ;;  %v1216_v63 = vld [vmem:[#allocation2 + $0x150] sm:$0xff]  ;;  %v1215_v3 = vld [vmem:[#allocation2 + $0x148] sm:$0xff]  ;;  %v1206_v4 = vld [vmem:[#allocation2 + $0x100] sm:$0xff] }
  0x1c   :  { %666 = vmatpush.bf16.msra.mxu2 %v1192_v21  ;;  %v1222_v5 = vld [vmem:[#allocation2 + $0x180] sm:$0xff]  ;;  %v43_v6 = vld [vmem:[%s1409_s0 + $0x30] sm:$0xff]  ;;  %v1245_v8 = vld [vmem:[#allocation2 + $0x238] sm:$0xff] }
  0x1d   :  { %679 = vmatpush.bf16.msra.mxu3 %v1200_v22  ;;  %v41_v7 = vld [vmem:[%s1409_s0 + $0x20] sm:$0xff]  ;;  %v44_v11 = vld [vmem:[%s1409_s0 + $0x38] sm:$0xff]  ;;  %v52_v12 = vpack.c.bf16 %v43_v6, %v43_v6  ;;  %v42_v14 = vld [vmem:[%s1409_s0 + $0x28] sm:$0xff] }
  0x1e   :  { %653 = vmatpush.bf16.msra.mxu1 %v1184_v23  ;;  %v1230_v9 = vld [vmem:[#allocation2 + $0x1c0] sm:$0xff]  ;;  %v50_v13 = vpack.c.bf16 %v41_v7, %v41_v7  ;;  %v1244_v15 = vld [vmem:[#allocation2 + $0x230] sm:$0xff]  ;;  %v53_v16 = vpack.c.bf16 %v44_v11, %v44_v11  ;;  %v51_v17 = vpack.c.bf16 %v42_v14, %v42_v14  ;;  %v1243_v18 = vld [vmem:[#allocation2 + $0x228] sm:$0xff] }
  0x1f   :  { %641 = vmatpush.bf16.msra.mxu0 %v1175_v24  ;;  %v1214_v10 = vld [vmem:[#allocation2 + $0x140] sm:$0xff]  ;;  %v1241_v20 = vld [vmem:[#allocation2 + $0x218] sm:$0xff]  ;;  %v1240_v21 = vld [vmem:[#allocation2 + $0x210] sm:$0xff] }
  0x20   :  { %667 = vmatpush.bf16.msra.mxu2 %v1191_v25  ;;  %v1242_v19 = vld [vmem:[#allocation2 + $0x220] sm:$0xff]  ;;  %v1239_v22 = vld [vmem:[#allocation2 + $0x208] sm:$0xff]  ;;  %v1248_v39 = vld [vmem:[%s1412_s3 + $0x10] sm:$0xff] }
  0x21   :  { %680 = vmatpush.bf16.msra.mxu3 %v1199_v26  ;;  %v1238_v23 = vld [vmem:[#allocation2 + $0x200] sm:$0xff]  ;;  %v1253_v26 = vld [vmem:[%s1412_s3 + $0x38] sm:$0xff] }
  0x22   :  { %654 = vmatpush.bf16.msra.mxu1 %v1183_v27  ;;  %v45_v24 = vld [vmem:[%s1409_s0 + $0x40] sm:$0xff] }
  0x23   :  { %642 = vmatpush.bf16.msra.mxu0 %v1174_v28  ;;  %v54_v25 = vpack.c.bf16 %v45_v24, %v45_v24 }
  0x24   :  { %668 = vmatpush.bf16.msra.mxu2 %v1190_v30  ;;  %v1251_v30 = vld [vmem:[%s1412_s3 + $0x28] sm:$0xff] }
  0x25   :  { %681 = vmatpush.bf16.msra.mxu3 %v1198_v34  ;;  %v1250_v34 = vld [vmem:[%s1412_s3 + $0x20] sm:$0xff] }
  0x26   :  { %655 = vmatpush.bf16.msra.mxu1 %v1182_v36  ;;  %643 = vmatmul.bf16.vlgmr.msra.gmra.mxu0 %v46_v41  ;;  %v1249_v36 = vld [vmem:[%s1412_s3 + $0x18] sm:$0xff]  ;;  %v1258_v41 = vld [vmem:[%s1411_s2] ss:$0 sm:$0xff] }
  0x27   :  { %687 = vmatpush.bf16.msrb.mxu0 %v1213_v29  ;;  %669 = vmatmul.bf16.vlgmr.msra.gmra.mxu2 %v48_v40  ;;  %v1252_v29 = vld [vmem:[%s1412_s3 + $0x30] sm:$0xff]  ;;  %v1247_v40 = vld [vmem:[%s1412_s3 + $0x8] sm:$0xff] }
  0x28   :  { %713 = vmatpush.bf16.msrb.mxu2 %v1229_v31  ;;  %682 = vmatmul.bf16.vlgmr.msra.gmra.mxu3 %v49_v44 }
  0x29   :  { %726 = vmatpush.bf16.msrb.mxu3 %v1237_v35  ;;  %656 = vmatmul.bf16.vlgmr.msra.gmra.mxu1 %v47_v45 }
  0x2a   :  { %700 = vmatpush.bf16.msrb.mxu1 %v1221_v37 }
  0x2b   :  { %688 = vmatpush.bf16.msrb.mxu0 %v1212_v42  ;;  %v1246_v42 = vld [vmem:[%s1412_s3] sm:$0xff] }
  0x2c   :  { %714 = vmatpush.bf16.msrb.mxu2 %v1228_v43 }
  0x2d   :  { %727 = vmatpush.bf16.msrb.mxu3 %v1236_v46 }
  0x2e   :  { %701 = vmatpush.bf16.msrb.mxu1 %v1220_v47 }
  0x2f   :  { %689 = vmatpush.bf16.msrb.mxu0 %v1211_v48 }
  0x30   :  { %715 = vmatpush.bf16.msrb.mxu2 %v1227_v49 }
  0x31   :  { %728 = vmatpush.bf16.msrb.mxu3 %v1235_v50 }
  0x32   :  { %702 = vmatpush.bf16.msrb.mxu1 %v1219_v51 }
  0x33   :  { %690 = vmatpush.bf16.msrb.mxu0 %v1210_v52 }
  0x34   :  { %716 = vmatpush.bf16.msrb.mxu2 %v1226_v53 }
  0x35   :  { %729 = vmatpush.bf16.msrb.mxu3 %v1234_v54 }
  0x36   :  { %703 = vmatpush.bf16.msrb.mxu1 %v1218_v55 }
  0x37   :  { %691 = vmatpush.bf16.msrb.mxu0 %v1209_v56 }
  0x38   :  { %717 = vmatpush.bf16.msrb.mxu2 %v1225_v57 }
  0x39   :  { %730 = vmatpush.bf16.msrb.mxu3 %v1233_v58 }
  0x3a   :  { %704 = vmatpush.bf16.msrb.mxu1 %v1217_v59 }
  0x3b   :  { %692 = vmatpush.bf16.msrb.mxu0 %v1208_v60 }
  0x3c   :  { %718 = vmatpush.bf16.msrb.mxu2 %v1224_v61 }
  0x3d   :  { %731 = vmatpush.bf16.msrb.mxu3 %v1232_v62 }
  0x3e   :  { %705 = vmatpush.bf16.msrb.mxu1 %v1216_v63 }
  0x3f   :  { %693 = vmatpush.bf16.msrb.mxu0 %v1207_v0  ;;  %v1259_v0 = vld [vmem:[%s1413_s4] ss:$0 sm:$0xff] }
  0x40   :  { %719 = vmatpush.bf16.msrb.mxu2 %v1223_v1 }
  0x41   :  { %732 = vmatpush.bf16.msrb.mxu3 %v1231_v2 }
  0x42   :  { %706 = vmatpush.bf16.msrb.mxu1 %v1215_v3 }
  0x43   :  { %694 = vmatpush.bf16.msrb.mxu0 %v1206_v4 }
  0x44   :  { %720 = vmatpush.bf16.msrb.mxu2 %v1222_v5 }
  0x45   :  { %733 = vmatpush.bf16.msrb.mxu3 %v1230_v9 }
  0x46   :  { %707 = vmatpush.bf16.msrb.mxu1 %v1214_v10  ;;  %695 = vmatmul.bf16.vlgmr.msrb.gmra.mxu0 %v50_v13 }
  0x47   :  { %739 = vmatpush.bf16.msra.mxu0 %v1245_v8  ;;  %721 = vmatmul.bf16.vlgmr.msrb.gmra.mxu2 %v52_v12 }
  0x48   :  { %734 = vmatmul.bf16.vlgmr.msrb.gmra.mxu3 %v53_v16 }
  0x49   :  { %708 = vmatmul.bf16.vlgmr.msrb.gmra.mxu1 %v51_v17 }
  0x4a   :  { %822 = vmatpush.bf16.msra.mxu1 %v1253_v26 }
  0x4b   :  { %740 = vmatpush.bf16.msra.mxu0 %v1244_v15 }
  0x4e   :  { %823 = vmatpush.bf16.msra.mxu1 %v1252_v29 }
  0x4f   :  { %741 = vmatpush.bf16.msra.mxu0 %v1243_v18 }
  0x52   :  { %824 = vmatpush.bf16.msra.mxu1 %v1251_v30 }
  0x53   :  { %742 = vmatpush.bf16.msra.mxu0 %v1242_v19 }
  0x56   :  { %825 = vmatpush.bf16.msra.mxu1 %v1250_v34 }
  0x57   :  { %743 = vmatpush.bf16.msra.mxu0 %v1241_v20 }
  0x5a   :  { %826 = vmatpush.bf16.msra.mxu1 %v1249_v36 }
  0x5b   :  { %744 = vmatpush.bf16.msra.mxu0 %v1240_v21 }
  0x5e   :  { %827 = vmatpush.bf16.msra.mxu1 %v1248_v39 }
  0x5f   :  { %745 = vmatpush.bf16.msra.mxu0 %v1239_v22 }
  0x62   :  { %828 = vmatpush.bf16.msra.mxu1 %v1247_v40 }
  0x63   :  { %746 = vmatpush.bf16.msra.mxu0 %v1238_v23 }
  0x66   :  { %747 = vmatmul.bf16.vlgmr.msra.gmra.mxu0 %v54_v25  ;;  %829 = vmatpush.bf16.msra.mxu1 %v1246_v42 }
  0xa3   :  { %v644_v27 = vpop.f32.mrf.mxu0 }
  0xa4   :  { %v645_v43 = vadd.f32 %v1258_v41, %v644_v27 }
  0xa6   :  { %v657_v28 = vpop.f32.mrf.mxu1 }
  0xa7   :  { %v658_v46 = vadd.f32 %v657_v28, %v645_v43 }
  0xaa   :  { %v670_v31 = vpop.f32.mrf.mxu2 }
  0xab   :  { %v683_v32 = vpop.f32.mrf.mxu3  ;;  %v646_v33 = vpop.f32.mrf.mxu0  ;;  %v671_v48 = vadd.f32 %v670_v31, %v658_v46 }
  0xad   :  { %v684_v52 = vadd.f32 %v683_v32, %v671_v48 }
  0xae   :  { %v659_v35 = vpop.f32.mrf.mxu1 }
  0xb2   :  { %v672_v37 = vpop.f32.mrf.mxu2 }
  0xb3   :  { %v685_v38 = vpop.f32.mrf.mxu3 }
  0xc3   :  { %v696_v44 = vpop.f32.mrf.mxu0 }
  0xc4   :  { %v697_v54 = vadd.f32 %v696_v44, %v684_v52 }
  0xc6   :  { %v709_v45 = vpop.f32.mrf.mxu1 }
  0xc7   :  { %v710_v56 = vadd.f32 %v709_v45, %v697_v54 }
  0xca   :  { %v722_v47 = vpop.f32.mrf.mxu2 }
  0xcb   :  { %v735_v49 = vpop.f32.mrf.mxu3  ;;  %v698_v50 = vpop.f32.mrf.mxu0  ;;  %v723_v57 = vadd.f32 %v722_v47, %v710_v56 }
  0xcd   :  { %v736_v58 = vadd.f32 %v735_v49, %v723_v57 }
  0xce   :  { %v711_v51 = vpop.f32.mrf.mxu1 }
  0xd2   :  { %v724_v53 = vpop.f32.mrf.mxu2 }
  0xd3   :  { %v737_v55 = vpop.f32.mrf.mxu3 }
  0xe3   :  { %v748_v59 = vpop.f32.mrf.mxu0 }
  0xe4   :  { %v749_v60 = vadd.f32 %v748_v59, %v736_v58 }
  0xe6   :  { %v752_v61 = vmax.f32 %v749_v60, 0.0 }
  0xe8   :  { %v753_v62 = vpack.c.bf16 %v752_v61, %v752_v61 }
  0xea   :  { %830 = vmatmul.bf16.vlgmr.msra.gmra.mxu1 %v753_v62 }
  0xeb   :  { %v750_v63 = vpop.f32.mrf.mxu0 }
 0x167   :  { %v831_v1 = vpop.f32.mrf.mxu1 }
 0x168   :  { %v832_v2 = vadd.f32 %v1259_v0, %v831_v1 }
 0x16a   :  { %836 = vst.msk [vmem:[#allocation5] sm:$0xff] %vm835_vm0, %v832_v2 }
 0x16b   :  { %847 = dma.vmem_to_hbm [thread:$0]  %s843_s9, 128, %s845_s12, [#allocation4]  }
 0x16f   :  { %v833_v3 = vpop.f32.mrf.mxu1 }
 0x170   :  { %1310 = dma.done.wait [#allocation4], 128  }
 0x171   :  { %1311 = vsyncadd [#allocation4], 4294967168 }
 0x172   :  { %852 = vsyncpa [#allocation3], 1 }
 0x173   :  { %853 = vsyncpa [#allocation4], 1 }

</bundles_post_ra>
